<compile_context>
chip_gen: v6e
topology: v6e:2x2x1
jax: 0.10.0
libtpu: 0.0.40
codegen_flags: <defaults>
</compile_context>

<pallas_src>
import functools

import numpy as np
import jax
import jax.numpy as jnp
from jax import lax
from jax.experimental import pallas as pl
from jax.experimental.pallas import tpu as pltpu


def mha_kernel(q_ref, k_ref, wqkv_ref, wfc_ref, bfc_ref,
               hmask_ref, seg_ref, bias_ref, o_ref, *, num_heads):
    """Fused MM_MultiHeadAttention forward for one block of query rows.

    q_ref    : (rb, Din)            bf16   query rows for this grid step
    k_ref    : (B*Lk, Din)          bf16   all key rows
    wqkv_ref : (Din, 3H)            bf16   fused [Wq | Wk | Wv]
    wfc_ref  : (H, H)               bf16
    bfc_ref  : (1, H)               f32
    hmask_ref: (nh*B*Lk, H)         bf16   head-lane mask on stacked K/V rows
    seg_ref  : (nh*B*Lk, nh*B*Lk)   f32    block-diag segment-sum matrix
    bias_ref : (rb, nh*B*Lk)        f32    0 / -1e9 cross-batch additive mask
    o_ref    : (rb, H)              f32
    """
    H = o_ref.shape[-1]

    # ---- fused lane-dense projections (one weight stream; f32 accumulate)
    Q = jnp.dot(q_ref[...], wqkv_ref[:, :H],
                preferred_element_type=jnp.float32)            # (rb, H)
    KV = jnp.dot(k_ref[...], wqkv_ref[:, H:],
                 preferred_element_type=jnp.float32)           # (B*Lk, 2H)

    # Fold the PyTorch literal /8 into the Q cast (exact: power of two).
    Qs = (Q * 0.125).astype(jnp.bfloat16)                      # (rb, H)
    KVb = KV.astype(jnp.bfloat16)
    Kb = KVb[:, :H]                                            # (B*Lk, H) bf16
    Vb = KVb[:, H:]

    # ---- head-stacked, head-masked K / V (h-major row replication).
    #      One tile + one bf16 multiply; no where/select, no concat list.
    hm = hmask_ref[...]
    Kst = jnp.tile(Kb, (num_heads, 1)) * hm                    # (nh*B*Lk, H)
    Vst = jnp.tile(Vb, (num_heads, 1)) * hm

    # ---- scores: contract over full H (off-head lanes are zero), lane-dense
    s = lax.dot_general(Qs, Kst,
                        dimension_numbers=(((1,), (1,)), ((), ())),
                        preferred_element_type=jnp.float32)    # (rb, nh*B*Lk)
    s = s + bias_ref[...]                  # kill cross-batch entries (-1e9)
    # Global per-row shift; per-segment softmax is shift-invariant.  Segments
    # that fully underflow give denom==0 -> clamped below -> 0 (no NaN).
    s = s - jnp.max(s, axis=-1, keepdims=True)
    p = jnp.exp(s)

    # Per-(batch,head) segment sums broadcast back across each segment via
    # one matmul with the block-diagonal ones matrix.
    denom = jnp.dot(p, seg_ref[...], preferred_element_type=jnp.float32)
    pn = (p * pl.reciprocal(jnp.maximum(denom, 1e-30), approx=True)
          ).astype(jnp.bfloat16)

    ctx = jnp.dot(pn, Vst, preferred_element_type=jnp.float32)  # (rb, H)

    # ---- output projection + bias (lane-dense epilogue)
    out = jnp.dot(ctx.astype(jnp.bfloat16), wfc_ref[...],
                  preferred_element_type=jnp.float32)
    o_ref[...] = (out + bfc_ref[...]).astype(o_ref.dtype)


@functools.lru_cache(maxsize=None)
def _build_masks(B, Lq, Lk, num_heads, H):
    """Host-side (trace-time) constant masks; h-major stacked-row ordering."""
    dh = H // num_heads
    S = num_heads * B * Lk
    s = np.arange(S)
    h_of_s = s // (B * Lk)                       # head of stacked row
    b_of_s = (s % (B * Lk)) // Lk                # batch of stacked row
    c = np.arange(H)
    hmask = (c[None, :] // dh == h_of_s[:, None]).astype(np.float32)   # (S,H)
    seg_id = s // Lk
    seg = (seg_id[:, None] == seg_id[None, :]).astype(np.float32)      # (S,S)
    r = np.arange(B * Lq)
    b_of_r = r // Lq
    bias = np.where(b_of_r[:, None] == b_of_s[None, :],
                    0.0, -1e9).astype(np.float32)                      # (B*Lq,S)
    return hmask, seg, bias


def prepare_params(wq, wk, wv, wfc, bfc):
    """One-time weight preparation (do at load time, not per call)."""
    wqkv = jnp.concatenate([wq, wk, wv], axis=1).astype(jnp.bfloat16)  # (Din,3H)
    wfc_bf = jnp.asarray(wfc, jnp.bfloat16)
    bfc_f = jnp.asarray(bfc, jnp.float32).reshape(1, -1)
    return wqkv, wfc_bf, bfc_f


@functools.partial(jax.jit, static_argnames=("num_heads",))
def mm_multihead_attention(query, key, wqkv, wfc_bf, bfc_f, *, num_heads):
    B, Lq, Din = query.shape
    _, Lk, _ = key.shape
    H = wfc_bf.shape[0]
    assert H % num_heads == 0
    S = num_heads * B * Lk

    hmask_np, seg_np, bias_np = _build_masks(B, Lq, Lk, num_heads, H)
    hmask = jnp.asarray(hmask_np, jnp.bfloat16)
    segm = jnp.asarray(seg_np, jnp.float32)
    bbias = jnp.asarray(bias_np, jnp.float32)

    q2 = query.reshape(B * Lq, Din).astype(jnp.bfloat16)
    k2 = key.reshape(B * Lk, Din).astype(jnp.bfloat16)

    rows = B * Lq
    n_blk = 2 if rows % 16 == 0 else 1       # v7x: one row block per TC
    rb = rows // n_blk

    kernel = functools.partial(mha_kernel, num_heads=num_heads)

    out = pl.pallas_call(
        kernel,
        out_shape=jax.ShapeDtypeStruct((rows, H), jnp.float32),
        grid=(n_blk,),
        in_specs=[
            pl.BlockSpec((rb, Din), lambda i: (i, 0)),         # query rows
            pl.BlockSpec((B * Lk, Din), lambda i: (0, 0)),     # key rows
            pl.BlockSpec((Din, 3 * H), lambda i: (0, 0)),      # fused Wqkv
            pl.BlockSpec((H, H), lambda i: (0, 0)),            # Wfc
            pl.BlockSpec((1, H), lambda i: (0, 0)),            # bfc
            pl.BlockSpec((S, H), lambda i: (0, 0)),            # head-lane mask
            pl.BlockSpec((S, S), lambda i: (0, 0)),            # segment-sum mat
            pl.BlockSpec((rb, S), lambda i: (i, 0)),           # cross-batch bias
        ],
        out_specs=pl.BlockSpec((rb, H), lambda i: (i, 0)),
        compiler_params=pltpu.CompilerParams(
            dimension_semantics=("parallel",)),
    )(q2, k2, wqkv, wfc_bf, bfc_f, hmask, segm, bbias)

    # PyTorch: x = x.reshape(bsz, -1)   ((B*Lq, H) row-major == (B, Lq, H))
    return out.reshape(B, Lq * H)


def reference(query, key, wq, wk, wv, wfc, bfc, *, num_heads):
    """Pure-JAX f32 reference mirroring the PyTorch forward (mask=None, eval)."""
    B, Lq, _ = query.shape
    H = wq.shape[1]
    dh = H // num_heads
    Q = query @ wq
    K = key @ wk
    V = key @ wv
    Q = Q.reshape(B, Lq, num_heads, dh).transpose(0, 2, 1, 3)
    K = K.reshape(B, -1, num_heads, dh).transpose(0, 2, 1, 3)
    V = V.reshape(B, -1, num_heads, dh).transpose(0, 2, 1, 3)
    att = jnp.einsum("bhqd,bhkd->bhqk", Q, K) / 8.0
    att = jax.nn.softmax(att, axis=-1)
    x = jnp.einsum("bhqk,bhkd->bhqd", att, V)
    x = x.transpose(0, 2, 1, 3).reshape(B, Lq, H)
    x = x @ wfc + bfc
    return x.reshape(B, -1)


if __name__ == "__main__":
    # Small shapes consistent with the module (scaled-down hidden size).
    B, LQ, LK = 2, 8, 8
    D_IN = 256          # module hardcodes 1024; scaled down for the demo
    NUM_HIDDENS = 256
    NUM_HEADS = 8       # head_dim = 32

    key0 = jax.random.PRNGKey(0)
    kq, kk, k1, k2, k3, k4, k5 = jax.random.split(key0, 7)

    query = jax.random.normal(kq, (B, LQ, D_IN), dtype=jnp.float32)
    keyx = jax.random.normal(kk, (B, LK, D_IN), dtype=jnp.float32)

    # Deterministic parameter init (synthetic weights, no checkpoint load).
    wq = jax.random.normal(k1, (D_IN, NUM_HIDDENS), dtype=jnp.float32) * 0.02
    wk = jax.random.normal(k2, (D_IN, NUM_HIDDENS), dtype=jnp.float32) * 0.02
    wv = jax.random.normal(k3, (D_IN, NUM_HIDDENS), dtype=jnp.float32) * 0.02
    wfc = jax.random.normal(k4, (NUM_HIDDENS, NUM_HIDDENS), dtype=jnp.float32) * 0.02
    bfc = jax.random.normal(k5, (1, NUM_HIDDENS), dtype=jnp.float32) * 0.02

    # One-time weight prep (hoisted out of the per-call path).
    wqkv, wfc_bf, bfc_f = prepare_params(wq, wk, wv, wfc, bfc)

    out = mm_multihead_attention(query, keyx, wqkv, wfc_bf, bfc_f,
                                 num_heads=NUM_HEADS)
    out = jax.block_until_ready(out)

    ref = reference(query, keyx, wq, wk, wv, wfc, bfc, num_heads=NUM_HEADS)
    assert out.shape == (B, LQ * NUM_HIDDENS), out.shape
    # Tolerance reflects the bf16 matmul path (f32 accumulation) vs f32 reference.
    assert jnp.allclose(out, ref, atol=1e-2, rtol=1e-2), "mismatch vs reference"

    print("KERNEL_OK")
</pallas_src>

<mosaic_0001>
module attributes {stable_mosaic.version = 11 : i64} {
  func.func @mha_kernel(%arg0: i32, %arg1: memref<8x256xbf16, #tpu.memory_space<vmem>>, %arg2: memref<16x256xbf16, #tpu.memory_space<vmem>>, %arg3: memref<256x768xbf16, #tpu.memory_space<vmem>>, %arg4: memref<256x256xbf16, #tpu.memory_space<vmem>>, %arg5: memref<1x256xf32, #tpu.memory_space<vmem>>, %arg6: memref<128x256xbf16, #tpu.memory_space<vmem>>, %arg7: memref<128x128xf32, #tpu.memory_space<vmem>>, %arg8: memref<8x128xf32, #tpu.memory_space<vmem>>, %arg9: memref<8x256xf32, #tpu.memory_space<vmem>>) attributes {dimension_semantics = [#tpu.dimension_semantics<parallel>], iteration_bounds = array<i64: 2>, scalar_prefetch = 0 : i64, scratch_operands = 0 : i64, tpu.core_type = #tpu.core_type<tc>, window_params = [{transform_indices = @transform_0, window_bounds = array<i64: 8, 256>}, {pipeline_mode = #tpu.pipeline_mode<synchronous>, transform_indices = @transform_1, window_bounds = array<i64: 16, 256>}, {pipeline_mode = #tpu.pipeline_mode<synchronous>, transform_indices = @transform_2, window_bounds = array<i64: 256, 768>}, {pipeline_mode = #tpu.pipeline_mode<synchronous>, transform_indices = @transform_3, window_bounds = array<i64: 256, 256>}, {pipeline_mode = #tpu.pipeline_mode<synchronous>, transform_indices = @transform_4, window_bounds = array<i64: 1, 256>}, {pipeline_mode = #tpu.pipeline_mode<synchronous>, transform_indices = @transform_5, window_bounds = array<i64: 128, 256>}, {pipeline_mode = #tpu.pipeline_mode<synchronous>, transform_indices = @transform_6, window_bounds = array<i64: 128, 128>}, {transform_indices = @transform_7, window_bounds = array<i64: 8, 128>}, {transform_indices = @transform_8, window_bounds = array<i64: 8, 256>}]} {
    %c0 = arith.constant 0 : index
    %c0_0 = arith.constant 0 : index
    %0 = vector.load %arg1[%c0, %c0_0] : memref<8x256xbf16, #tpu.memory_space<vmem>>, vector<8x256xbf16>
    %c0_1 = arith.constant 0 : index
    %c0_2 = arith.constant 0 : index
    %1 = vector.load %arg3[%c0_1, %c0_2] : memref<256x768xbf16, #tpu.memory_space<vmem>>, vector<256x256xbf16>
    %cst = arith.constant dense<0.000000e+00> : vector<8x256xf32>
    %2 = tpu.matmul %0, %1, %cst {dimension_numbers = #tpu.dot_dimension_numbers<[1], [0], [0], [1], [0, 0, 1, 1], [], []>} : vector<8x256xbf16>, vector<256x256xbf16>, vector<8x256xf32> -> vector<8x256xf32>
    %c0_3 = arith.constant 0 : index
    %c0_4 = arith.constant 0 : index
    %3 = vector.load %arg2[%c0_3, %c0_4] : memref<16x256xbf16, #tpu.memory_space<vmem>>, vector<16x256xbf16>
    %c0_5 = arith.constant 0 : index
    %c256 = arith.constant 256 : index
    %4 = vector.load %arg3[%c0_5, %c256] : memref<256x768xbf16, #tpu.memory_space<vmem>>, vector<256x512xbf16>
    %cst_6 = arith.constant dense<0.000000e+00> : vector<16x512xf32>
    %5 = tpu.matmul %3, %4, %cst_6 {dimension_numbers = #tpu.dot_dimension_numbers<[1], [0], [0], [1], [0, 0, 1, 1], [], []>} : vector<16x256xbf16>, vector<256x512xbf16>, vector<16x512xf32> -> vector<16x512xf32>
    %cst_7 = arith.constant 1.250000e-01 : f32
    %6 = vector.broadcast %cst_7 : f32 to vector<8x256xf32>
    %7 = arith.mulf %2, %6 : vector<8x256xf32>
    %8 = arith.truncf %7 : vector<8x256xf32> to vector<8x256xbf16>
    %9 = arith.truncf %5 : vector<16x512xf32> to vector<16x512xbf16>
    %10 = vector.extract_strided_slice %9 {offsets = [0, 0], sizes = [16, 256], strides = [1, 1]} : vector<16x512xbf16> to vector<16x256xbf16>
    %11 = vector.extract_strided_slice %9 {offsets = [0, 256], sizes = [16, 256], strides = [1, 1]} : vector<16x512xbf16> to vector<16x256xbf16>
    %c0_8 = arith.constant 0 : index
    %c0_9 = arith.constant 0 : index
    %12 = vector.load %arg6[%c0_8, %c0_9] : memref<128x256xbf16, #tpu.memory_space<vmem>>, vector<128x256xbf16>
    %13 = tpu.concatenate %10, %10, %10, %10, %10, %10, %10, %10 in 0 : vector<16x256xbf16>, vector<16x256xbf16>, vector<16x256xbf16>, vector<16x256xbf16>, vector<16x256xbf16>, vector<16x256xbf16>, vector<16x256xbf16>, vector<16x256xbf16> -> vector<128x256xbf16>
    %14 = arith.mulf %13, %12 : vector<128x256xbf16>
    %15 = tpu.concatenate %11, %11, %11, %11, %11, %11, %11, %11 in 0 : vector<16x256xbf16>, vector<16x256xbf16>, vector<16x256xbf16>, vector<16x256xbf16>, vector<16x256xbf16>, vector<16x256xbf16>, vector<16x256xbf16>, vector<16x256xbf16> -> vector<128x256xbf16>
    %16 = arith.mulf %15, %12 : vector<128x256xbf16>
    %cst_10 = arith.constant dense<0.000000e+00> : vector<8x128xf32>
    %17 = tpu.matmul %8, %14, %cst_10 {dimension_numbers = #tpu.dot_dimension_numbers<[1], [1], [0], [0], [0, 0, 1, 0], [], []>} : vector<8x256xbf16>, vector<128x256xbf16>, vector<8x128xf32> -> vector<8x128xf32>
    %c0_11 = arith.constant 0 : index
    %c0_12 = arith.constant 0 : index
    %18 = vector.load %arg8[%c0_11, %c0_12] : memref<8x128xf32, #tpu.memory_space<vmem>>, vector<8x128xf32>
    %19 = arith.addf %17, %18 : vector<8x128xf32>
    %cst_13 = arith.constant dense<0xFF800000> : vector<8xf32>
    %20 = vector.multi_reduction <maximumf>, %19, %cst_13 [1] : vector<8x128xf32> to vector<8xf32>
    %21 = vector.shape_cast %20 : vector<8xf32> to vector<8x1xf32>
    %22 = vector.broadcast %21 : vector<8x1xf32> to vector<8x128xf32>
    %23 = arith.subf %19, %22 : vector<8x128xf32>
    %24 = math.exp %23 : vector<8x128xf32>
    %c0_14 = arith.constant 0 : index
    %c0_15 = arith.constant 0 : index
    %25 = vector.load %arg7[%c0_14, %c0_15] : memref<128x128xf32, #tpu.memory_space<vmem>>, vector<128x128xf32>
    %cst_16 = arith.constant dense<0.000000e+00> : vector<8x128xf32>
    %26 = tpu.matmul %24, %25, %cst_16 {dimension_numbers = #tpu.dot_dimension_numbers<[1], [0], [0], [1], [0, 0, 1, 1], [], []>} : vector<8x128xf32>, vector<128x128xf32>, vector<8x128xf32> -> vector<8x128xf32>
    %cst_17 = arith.constant 1.000000e-30 : f32
    %27 = vector.broadcast %cst_17 : f32 to vector<8x128xf32>
    %28 = arith.maximumf %26, %27 : vector<8x128xf32>
    %29 = tpu.reciprocal %28 {approx = true} : vector<8x128xf32> -> vector<8x128xf32>
    %30 = arith.mulf %24, %29 : vector<8x128xf32>
    %31 = arith.truncf %30 : vector<8x128xf32> to vector<8x128xbf16>
    %cst_18 = arith.constant dense<0.000000e+00> : vector<8x256xf32>
    %32 = tpu.matmul %31, %16, %cst_18 {dimension_numbers = #tpu.dot_dimension_numbers<[1], [0], [0], [1], [0, 0, 1, 1], [], []>} : vector<8x128xbf16>, vector<128x256xbf16>, vector<8x256xf32> -> vector<8x256xf32>
    %33 = arith.truncf %32 : vector<8x256xf32> to vector<8x256xbf16>
    %c0_19 = arith.constant 0 : index
    %c0_20 = arith.constant 0 : index
    %34 = vector.load %arg4[%c0_19, %c0_20] : memref<256x256xbf16, #tpu.memory_space<vmem>>, vector<256x256xbf16>
    %cst_21 = arith.constant dense<0.000000e+00> : vector<8x256xf32>
    %35 = tpu.matmul %33, %34, %cst_21 {dimension_numbers = #tpu.dot_dimension_numbers<[1], [0], [0], [1], [0, 0, 1, 1], [], []>} : vector<8x256xbf16>, vector<256x256xbf16>, vector<8x256xf32> -> vector<8x256xf32>
    %c0_22 = arith.constant 0 : index
    %c0_23 = arith.constant 0 : index
    %36 = vector.load %arg5[%c0_22, %c0_23] : memref<1x256xf32, #tpu.memory_space<vmem>>, vector<1x256xf32>
    %37 = vector.broadcast %36 : vector<1x256xf32> to vector<8x256xf32>
    %38 = arith.addf %35, %37 : vector<8x256xf32>
    %c0_24 = arith.constant 0 : index
    %c0_25 = arith.constant 0 : index
    %39 = vector.load %arg9[%c0_24, %c0_25] : memref<8x256xf32, #tpu.memory_space<vmem>>, vector<8x256xf32>
    tpu.vector_store %arg9[%c0_24, %c0_25], %38 {strides = array<i32>} : memref<8x256xf32, #tpu.memory_space<vmem>>, vector<8x256xf32>,
    return
  }
  func.func @transform_0(%arg0: i32) -> (i32, i32) {
    %c0_i32 = arith.constant 0 : i32
    %c0_i32_0 = arith.constant 0 : i32
    return %arg0, %c0_i32 : i32, i32
  }
  func.func @transform_1(%arg0: i32) -> (i32, i32) {
    %c0_i32 = arith.constant 0 : i32
    %c0_i32_0 = arith.constant 0 : i32
    %c0_i32_1 = arith.constant 0 : i32
    return %c0_i32, %c0_i32_0 : i32, i32
  }
  func.func @transform_2(%arg0: i32) -> (i32, i32) {
    %c0_i32 = arith.constant 0 : i32
    %c0_i32_0 = arith.constant 0 : i32
    %c0_i32_1 = arith.constant 0 : i32
    return %c0_i32, %c0_i32_0 : i32, i32
  }
  func.func @transform_3(%arg0: i32) -> (i32, i32) {
    %c0_i32 = arith.constant 0 : i32
    %c0_i32_0 = arith.constant 0 : i32
    %c0_i32_1 = arith.constant 0 : i32
    return %c0_i32, %c0_i32_0 : i32, i32
  }
  func.func @transform_4(%arg0: i32) -> (i32, i32) {
    %c0_i32 = arith.constant 0 : i32
    %c0_i32_0 = arith.constant 0 : i32
    %c0_i32_1 = arith.constant 0 : i32
    return %c0_i32, %c0_i32_0 : i32, i32
  }
  func.func @transform_5(%arg0: i32) -> (i32, i32) {
    %c0_i32 = arith.constant 0 : i32
    %c0_i32_0 = arith.constant 0 : i32
    %c0_i32_1 = arith.constant 0 : i32
    return %c0_i32, %c0_i32_0 : i32, i32
  }
  func.func @transform_6(%arg0: i32) -> (i32, i32) {
    %c0_i32 = arith.constant 0 : i32
    %c0_i32_0 = arith.constant 0 : i32
    %c0_i32_1 = arith.constant 0 : i32
    return %c0_i32, %c0_i32_0 : i32, i32
  }
  func.func @transform_7(%arg0: i32) -> (i32, i32) {
    %c0_i32 = arith.constant 0 : i32
    %c0_i32_0 = arith.constant 0 : i32
    return %arg0, %c0_i32 : i32, i32
  }
  func.func @transform_8(%arg0: i32) -> (i32, i32) {
    %c0_i32 = arith.constant 0 : i32
    %c0_i32_0 = arith.constant 0 : i32
    return %arg0, %c0_i32 : i32, i32
  }
}

</mosaic_0001>

<bundles_post_ra>
// kernel: mm_multihead_attention.1
= control target key start
LH: loop header
LB: loop body
LE: loop exit
PB: predicated region body
PF: predicated region fallthrough
CT: control target
= control target key end

     0   :  { %13 = vsyncpa [#allocation3], 0  ;;  %s2673_s0 = inlined_call_operand.vmem [shape: bf16[16,256], index: 0, kind: input, shape index: {}]   ;;  %s2674_s1 = inlined_call_operand.vmem [shape: bf16[16,256], index: 1, kind: input, shape index: {}]   ;;  %s2675_s2 = inlined_call_operand.hbm [shape: bf16[256,768], index: 2, kind: input, shape index: {}]   ;;  %s2676_s3 = inlined_call_operand.hbm [shape: bf16[256,256], index: 3, kind: input, shape index: {}]   ;;  %s2677_s4 = inlined_call_operand.vmem [shape: f32[1,256], index: 4, kind: input, shape index: {}]   ;;  %s2678_s5 = inlined_call_operand.hbm [shape: bf16[128,256], index: 5, kind: input, shape index: {}]   ;;  %s2679_s6 = inlined_call_operand.hbm [shape: f32[128,128], index: 6, kind: input, shape index: {}]   ;;  %s2680_s7 = inlined_call_operand.vmem [shape: f32[16,128], index: 7, kind: input, shape index: {}]   ;;  %s2681_s8 = inlined_call_operand.vmem [shape: f32[16,256], index: 8, kind: output, shape index: {}]  }
   0x1   :  { %14 = vsyncpa [#allocation5], 0 }
   0x2   :  { %15 = vsyncpa [#allocation8], 0  ;;  %s2459_s27 = smov 0  }
   0x3 LB: > { %s2403_s28 = smov [#allocation4]   ;;  %s2465_s30 = sadd.s32 4294967295, %s2401_s27   ;;  %s2401_s27 = sphi %s2459_s27, %s21_s27  }
   0x4   : > { %s258_s29 = sshll.u32 %s2403_s28, 4  ;;  %p1778_p0 = scmp.ge.s32.totalorder %s2401_s27, 1  ;;  %s259_s29 = int_to_ptr.vmem [resolvable:$true] %s258_s29 }
   0x5   : > { %p230_p1 = scmp.lt.s32.totalorder %s2401_s27, 3  ;;  %p2027_p2 = scmp.eq.s32.totalorder %s2465_s30, 0 }
   0x6   : > { %s2404_s10 = smov [#allocation2]   ;;  %s2405_s13 = smov [#allocation6]  }
   0x7   : > { %p2470_p3 = pnand %p1778_p0, %p230_p1  ;;  %s245_s11 = sshll.u32 %s2404_s10, 4  ;;  %s2476_s11 = int_to_ptr.vmem [resolvable:$true] %s245_s11 }
   0x8   : > { %s2484_s14 = sshll.u32 %s2405_s13, 4  ;;  %s2290_s15 = scalar_lea.vmem %s259_s29, 4096  ;;  %s275_s14 = int_to_ptr.vmem [resolvable:$true] %s2484_s14 }
   0x9   : > { %p2014_p4 = pneg %p2470_p3  ;;  %p2291_p7 = scmp.ne.s32.totalorder %s259_s29, %s2290_s15 }
   0xa   : > { %p2298_p10 = scmp.lt.s32.totalorder %s259_s29, %s259_s29  ;;  %p2299_p11 = scmp.lt.s32.totalorder %s2290_s15, %s2290_s15 }
   0xb   : > { %p2480_p5 = pnand %p2027_p2, %p2014_p4 }
   0xc   : > { %p2300_p12 = por %p2299_p11, %p2298_p10 }
   0xd   : > { %p2281_p6 = pneg %p2480_p5 }
   0xf   : > { %p2293_p8 = pnand %p2291_p7, %p2281_p6 }
  0x11   : > { %p2294_p9 = pneg %p2293_p8 }
  0x13   : > { %p2301_p13 = pnand %p2300_p12, %p2294_p9 }
  0x15   : > { %2304 = shalt.err (!%p2301_p13)
}
  0x16   : > { %s2406_s16 = smov 128   ;;  %s2407_s17 = smov 8  }
  0x17   : > { %2020 = dma.hbm_to_vmem [thread:$0]  (!%p2480_p5), %s2676_s3, 4096, %s259_s29, [#allocation5], %s2406_s16, %s2406_s16, %s2407_s17  }
  0x18   : > { %s2316_s20 = scalar_lea.vmem %s2476_s11, 12288  ;;  %p2324_p7 = scmp.lt.s32.totalorder %s2476_s11, %s2476_s11 }
  0x19   : > { %p2317_p0 = scmp.ne.s32.totalorder %s2476_s11, %s2316_s20  ;;  %p2325_p8 = scmp.lt.s32.totalorder %s2316_s20, %s2316_s20 }
  0x1b   : > { %p2319_p1 = pnand %p2317_p0, %p2281_p6  ;;  %p2326_p9 = por %p2325_p8, %p2324_p7 }
  0x1d   : > { %p2320_p4 = pneg %p2319_p1 }
  0x1f   : > { %p2327_p10 = pnand %p2326_p9, %p2320_p4 }
  0x21   : > { %2330 = shalt.err (!%p2327_p10)
}
  0x22   : > { %s2408_s21 = smov 384   ;;  %s2409_s22 = smov 24  }
  0x23   : > { %2017 = dma.hbm_to_vmem [thread:$0]  (!%p2480_p5), %s2675_s2, 12288, %s2476_s11, [#allocation3], %s2408_s21, %s2408_s21, %s2409_s22  }
  0x24   : > { %s2410_s25 = smov [#allocation7]   ;;  %s2342_s28 = scalar_lea.vmem %s275_s14, 2048 }
  0x25   : > { %s287_s26 = sshll.u32 %s2410_s25, 4  ;;  %p2343_p11 = scmp.ne.s32.totalorder %s275_s14, %s2342_s28  ;;  %s288_s26 = int_to_ptr.vmem [resolvable:$true] %s287_s26 }
  0x26   : > { %p2350_p0 = scmp.lt.s32.totalorder %s275_s14, %s275_s14  ;;  %p2351_p1 = scmp.lt.s32.totalorder %s2342_s28, %s2342_s28 }
  0x27   : > { %p2345_p12 = pnand %p2343_p11, %p2281_p6 }
  0x28   : > { %p2352_p4 = por %p2351_p1, %p2350_p0 }
  0x29   : > { %p2346_p13 = pneg %p2345_p12 }
  0x2b   : > { %p2353_p7 = pnand %p2352_p4, %p2346_p13 }
  0x2d   : > { %2356 = shalt.err (!%p2353_p7)
}
  0x2e   : > { %2023 = dma.hbm_to_vmem [thread:$0]  (!%p2480_p5), %s2678_s5, 2048, %s275_s14, [#allocation5], %s2406_s16, %s2406_s16, %s2407_s17  }
  0x2f   : > { %s2368_s11 = scalar_lea.vmem %s288_s26, 2048  ;;  %p2376_p11 = scmp.lt.s32.totalorder %s288_s26, %s288_s26 }
  0x30   : > { %p2369_p8 = scmp.ne.s32.totalorder %s288_s26, %s2368_s11  ;;  %p2377_p12 = scmp.lt.s32.totalorder %s2368_s11, %s2368_s11 }
  0x32   : > { %p2371_p9 = pnand %p2369_p8, %p2281_p6  ;;  %p2378_p13 = por %p2377_p12, %p2376_p11 }
  0x34   : > { %p2372_p10 = pneg %p2371_p9 }
  0x36   : > { %p2379_p0 = pnand %p2378_p13, %p2372_p10 }
  0x38   : > { %2382 = shalt.err (!%p2379_p0)
}
  0x39   : > { %2026 = dma.hbm_to_vmem [thread:$0]  (!%p2480_p5), %s2679_s6, 2048, %s288_s26, [#allocation8], %s2406_s16, %s2406_s16, %s2407_s17  }
  0x3a   : > { %318 = sbr.rel (%p2470_p3) target bundleno = 1361 (0x551), region = 52 }
  0x3f   : > { %2388 = dma.done.wait (%p2027_p2), [#allocation3], 12288  }
  0x40   : > { %2390 = vsyncadd (%p2027_p2), [#allocation3], 4294955008 }
  0x41   : > { %2392 = dma.done.wait (%p2027_p2), [#allocation5], 6144  }
  0x42   : > { %2394 = vsyncadd (%p2027_p2), [#allocation5], 4294961152 }
  0x43   : > { %2396 = dma.done.wait (%p2027_p2), [#allocation8], 2048  }
  0x44   : > { %2398 = vsyncadd (%p2027_p2), [#allocation8], 4294965248  ;;  %v2054_v0 = vld [vmem:[#allocation2 + $0x15c] ss:$24 sps:$4 sm:$0xff]   ;;  %v2056_v1 = vld [vmem:[#allocation2 + $0x158] ss:$24 sps:$4 sm:$0xff]  }
  0x45   : > { %1020 = vmatprep.subr.bf16.mxu1 %v2054_v0  ;;  %v2057_v2 = vld [vmem:[#allocation2 + $0x12c] ss:$24 sps:$4 sm:$0xff]   ;;  %v2059_v3 = vld [vmem:[#allocation2 + $0x128] ss:$24 sps:$4 sm:$0xff]   ;;  %v2060_v4 = vld [vmem:[#allocation2 + $0xfc] ss:$24 sps:$4 sm:$0xff]  }
  0x46   : > { %1021 = vmatpush1.bf16.msra.mxu1 %v2056_v1  ;;  %v2062_v5 = vld [vmem:[#allocation2 + $0xf8] ss:$24 sps:$4 sm:$0xff]   ;;  %v2063_v6 = vld [vmem:[#allocation2 + $0xcc] ss:$24 sps:$4 sm:$0xff]   ;;  %v2065_v7 = vld [vmem:[#allocation2 + $0xc8] ss:$24 sps:$4 sm:$0xff]  }
  0x47   : > { %1022 = vmatprep.subr.bf16.mxu1 %v2057_v2  ;;  %v2066_v8 = vld [vmem:[#allocation2 + $0x9c] ss:$24 sps:$4 sm:$0xff]   ;;  %v2068_v9 = vld [vmem:[#allocation2 + $0x98] ss:$24 sps:$4 sm:$0xff]   ;;  %v2069_v10 = vld [vmem:[#allocation2 + $0x6c] ss:$24 sps:$4 sm:$0xff]  }
  0x48   : > { %v2071_v11 = vld [vmem:[#allocation2 + $0x68] ss:$24 sps:$4 sm:$0xff]   ;;  %v2072_v12 = vld [vmem:[#allocation2 + $0x3c] ss:$24 sps:$4 sm:$0xff]   ;;  %v2074_v14 = vld [vmem:[#allocation2 + $0x38] ss:$24 sps:$4 sm:$0xff]  }
  0x49   : > { %v2101_v13 = vld [vmem:[#allocation2 + $0x154] ss:$24 sps:$4 sm:$0xff]   ;;  %v2104_v15 = vld [vmem:[#allocation2 + $0x150] ss:$24 sps:$4 sm:$0xff]   ;;  %v2108_v18 = vld [vmem:[#allocation2 + $0x124] ss:$24 sps:$4 sm:$0xff]  }
  0x4a   : > { %1023 = vmatpush1.bf16.msra.mxu1 %v2059_v3  ;;  %v2075_v16 = vld [vmem:[#allocation2 + $0xc] ss:$24 sps:$4 sm:$0xff]   ;;  %583 = vmatprep.subr.bf16.mxu0 %v2101_v13  ;;  %v2110_v19 = vld [vmem:[#allocation2 + $0x120] ss:$24 sps:$4 sm:$0xff]   ;;  %v2078_v22 = vld [vmem:[#allocation2 + $0x2dc] ss:$24 sps:$4 sm:$0xff]  }
  0x4b   : > { %1024 = vmatprep.subr.bf16.mxu1 %v2060_v4  ;;  %v2552_v17 = vld [vmem:[%s2674_s1 + $0x4] ss:$8 sps:$4 sm:$0xff]   ;;  %584 = vmatpush1.bf16.msra.mxu0 %v2104_v15  ;;  %v2077_v21 = vld [vmem:[#allocation2 + $0x8] ss:$24 sps:$4 sm:$0xff]   ;;  %p368_p2 = scmp.lt.s32.totalorder %s2465_s30, 1  ;;  %vm2412_vm0 = vmmov 0  }
  0x4c   : > { %1052 = vmatprep.mubr.bf16.mxu1 %v2552_v17  ;;  %585 = vmatprep.subr.bf16.mxu0 %v2108_v18  ;;  %v2111_v20 = vld [vmem:[#allocation2 + $0xf4] ss:$24 sps:$4 sm:$0xff]   ;;  %v2113_v23 = vld [vmem:[#allocation2 + $0xf0] ss:$24 sps:$4 sm:$0xff]   ;;  %v2114_v24 = vld [vmem:[#allocation2 + $0xc4] ss:$24 sps:$4 sm:$0xff]  }
  0x4d   : > { %v2080_v25 = vld [vmem:[#allocation2 + $0x2d8] ss:$24 sps:$4 sm:$0xff]   ;;  %v2081_v26 = vld [vmem:[#allocation2 + $0x2ac] ss:$24 sps:$4 sm:$0xff]   ;;  %s2685_s30 = smov (!%p368_p2, %s2465_s30), 1 }
  0x4e   : > { %1025 = vmatpush1.bf16.msra.mxu1 %v2062_v5  ;;  %v2116_v27 = vld [vmem:[#allocation2 + $0xc0] ss:$24 sps:$4 sm:$0xff]   ;;  %v2117_v28 = vld [vmem:[#allocation2 + $0x94] ss:$24 sps:$4 sm:$0xff]   ;;  %v2119_v31 = vld [vmem:[#allocation2 + $0x90] ss:$24 sps:$4 sm:$0xff]  }
  0x4f   : > { %1026 = vmatprep.subr.bf16.mxu1 %v2063_v6  ;;  %586 = vmatpush1.bf16.msra.mxu0 %v2110_v19  ;;  %v2083_v29 = vld [vmem:[#allocation2 + $0x2a8] ss:$24 sps:$4 sm:$0xff]   ;;  %v2084_v30 = vld [vmem:[#allocation2 + $0x27c] ss:$24 sps:$4 sm:$0xff]   ;;  %s1944_s14 = sshll.u32 %s2685_s30, 3  ;;  %s1945_s26 = sshll.u32 %s2685_s30, 4 }
  0x50   : > { %587 = vmatprep.subr.bf16.mxu0 %v2111_v20  ;;  %v2120_v32 = vld [vmem:[#allocation2 + $0x64] ss:$24 sps:$4 sm:$0xff]   ;;  %v2086_v33 = vld [vmem:[#allocation2 + $0x278] ss:$24 sps:$4 sm:$0xff]   ;;  %v2123_v36 = vld [vmem:[#allocation2 + $0x34] ss:$24 sps:$4 sm:$0xff]   ;;  %s372_s18 = scalar_lea.vmem %s2673_s0, %s1944_s14  ;;  %s376_s23 = scalar_lea.vmem %s2680_s7, %s1944_s14 }
  0x51   : > { %v2087_v34 = vld [vmem:[#allocation2 + $0x24c] ss:$24 sps:$4 sm:$0xff]   ;;  %v2122_v35 = vld [vmem:[#allocation2 + $0x60] ss:$24 sps:$4 sm:$0xff]   ;;  %v2090_v38 = vld [vmem:[#allocation2 + $0x21c] ss:$24 sps:$4 sm:$0xff]   ;;  %s381_s10 = scalar_lea.vmem %s2681_s8, %s1945_s26 }
  0x52   : > { %1027 = vmatpush1.bf16.msra.mxu1 %v2065_v7  ;;  %v2089_v37 = vld [vmem:[#allocation2 + $0x248] ss:$24 sps:$4 sm:$0xff]   ;;  %v2126_v40 = vld [vmem:[#allocation2 + $0x4] ss:$24 sps:$4 sm:$0xff]   ;;  %v2092_v42 = vld [vmem:[#allocation2 + $0x218] ss:$24 sps:$4 sm:$0xff]  }
  0x53   : > { %1028 = vmatprep.subr.bf16.mxu1 %v2066_v8  ;;  %588 = vmatpush1.bf16.msra.mxu0 %v2113_v23  ;;  %v2125_v39 = vld [vmem:[#allocation2 + $0x30] ss:$24 sps:$4 sm:$0xff]   ;;  %v383_v41 = vld [vmem:[%s372_s18] sm:$0xff]  ;;  %v2129_v46 = vld [vmem:[#allocation2 + $0x2d4] ss:$24 sps:$4 sm:$0xff]  }
  0x54   : > { %589 = vmatprep.subr.bf16.mxu0 %v2114_v24  ;;  %v1795_v43 = vcombine.high %v383_v41, %v383_v41  ;;  %v2093_v44 = vld [vmem:[#allocation2 + $0x1ec] ss:$24 sps:$4 sm:$0xff]   ;;  %v2128_v45 = vld [vmem:[#allocation2] ss:$24 sps:$4 sm:$0xff]   ;;  %v2096_v48 = vld [vmem:[#allocation2 + $0x1bc] ss:$24 sps:$4 sm:$0xff]   ;;  %v1794_v4 = vcombine.low %v383_v41, %v383_v41 }
  0x55   : > { %v2095_v47 = vld [vmem:[#allocation2 + $0x1e8] ss:$24 sps:$4 sm:$0xff]   ;;  %v2132_v50 = vld [vmem:[#allocation2 + $0x2a4] ss:$24 sps:$4 sm:$0xff]   ;;  %v2098_v51 = vld [vmem:[#allocation2 + $0x1b8] ss:$24 sps:$4 sm:$0xff]  }
  0x56   : > { %1029 = vmatpush1.bf16.msra.mxu1 %v2068_v9  ;;  %615 = vmatprep.mubr.bf16.mxu0 %v1795_v43  ;;  %v2131_v49 = vld [vmem:[#allocation2 + $0x2d0] ss:$24 sps:$4 sm:$0xff]   ;;  %v2099_v52 = vld [vmem:[#allocation2 + $0x18c] ss:$24 sps:$4 sm:$0xff]   ;;  %v2134_v53 = vld [vmem:[#allocation2 + $0x2a0] ss:$24 sps:$4 sm:$0xff]  }
  0x57   : > { %1030 = vmatprep.subr.bf16.mxu1 %v2069_v10  ;;  %590 = vmatpush1.bf16.msra.mxu0 %v2116_v27  ;;  %v2135_v54 = vld [vmem:[#allocation2 + $0x274] ss:$24 sps:$4 sm:$0xff]   ;;  %v2103_v55 = vld [vmem:[#allocation2 + $0x188] ss:$24 sps:$4 sm:$0xff]   ;;  %v2138_v57 = vld [vmem:[#allocation2 + $0x244] ss:$24 sps:$4 sm:$0xff]  }
  0x58   : > { %591 = vmatprep.subr.bf16.mxu0 %v2117_v28  ;;  %v2137_v56 = vld [vmem:[#allocation2 + $0x270] ss:$24 sps:$4 sm:$0xff]   ;;  %v2140_v59 = vld [vmem:[#allocation2 + $0x240] ss:$24 sps:$4 sm:$0xff]   ;;  %v2141_v60 = vld [vmem:[#allocation2 + $0x214] ss:$24 sps:$4 sm:$0xff]  }
  0x59   : > { %v2568_v58 = vld [vmem:[%s2674_s1] ss:$8 sps:$4 sm:$0xff]   ;;  %v2144_v62 = vld [vmem:[#allocation2 + $0x1e4] ss:$24 sps:$4 sm:$0xff]   ;;  %v2147_v0 = vld [vmem:[#allocation2 + $0x1b4] ss:$24 sps:$4 sm:$0xff]  }
  0x5a   : > { %1031 = vmatpush1.bf16.msra.mxu1 %v2071_v11  ;;  %v2143_v61 = vld [vmem:[#allocation2 + $0x210] ss:$24 sps:$4 sm:$0xff]   ;;  %v2146_v63 = vld [vmem:[#allocation2 + $0x1e0] ss:$24 sps:$4 sm:$0xff]   ;;  %v2150_v2 = vld [vmem:[#allocation2 + $0x184] ss:$24 sps:$4 sm:$0xff]  }
  0x5b   : > { %1032 = vmatprep.subr.bf16.mxu1 %v2072_v12  ;;  %592 = vmatpush1.bf16.msra.mxu0 %v2119_v31  ;;  %v2149_v1 = vld [vmem:[#allocation2 + $0x1b0] ss:$24 sps:$4 sm:$0xff]   ;;  %v2152_v3 = vld [vmem:[#allocation2 + $0x180] ss:$24 sps:$4 sm:$0xff]   ;;  %v2572_v8 = vld [vmem:[#allocation6 + $0x74] ss:$8 sps:$4 sm:$0xff]  }
  0x5c   : > { %593 = vmatprep.subr.bf16.mxu0 %v2120_v32  ;;  %v2574_v11 = vld [vmem:[#allocation6 + $0x70] ss:$8 sps:$4 sm:$0xff]   ;;  %v2576_v13 = vld [vmem:[#allocation6 + $0x64] ss:$8 sps:$4 sm:$0xff]   ;;  %v2583_v18 = vld [vmem:[#allocation6 + $0x54] ss:$8 sps:$4 sm:$0xff]  }
  0x5d   : > { %v2589_v23 = vld [vmem:[#allocation6 + $0x44] ss:$8 sps:$4 sm:$0xff]   ;;  %v2593_v31 = vld [vmem:[#allocation6 + $0x40] ss:$8 sps:$4 sm:$0xff]   ;;  %v2595_v32 = vld [vmem:[#allocation6 + $0x34] ss:$8 sps:$4 sm:$0xff]  }
  0x5e   : > { %1033 = vmatpush1.bf16.msra.mxu1 %v2074_v14  ;;  %v2611_v43 = vld [vmem:[#allocation6 + $0x10] ss:$8 sps:$4 sm:$0xff]  }
  0x5f   : > { %1034 = vmatprep.subr.bf16.mxu1 %v2075_v16  ;;  %594 = vmatpush1.bf16.msra.mxu0 %v2122_v35  ;;  %v2599_v35 = vld [vmem:[#allocation6 + $0x30] ss:$8 sps:$4 sm:$0xff]  }
  0x60   : > { %595 = vmatprep.subr.bf16.mxu0 %v2123_v36  ;;  %v2601_v36 = vld [vmem:[#allocation6 + $0x24] ss:$8 sps:$4 sm:$0xff]  }
  0x62   : > { %1035 = vmatpush1.bf16.msra.mxu1 %v2077_v21 }
  0x63   : > { %1036 = vmatprep.subr.bf16.mxu1 %v2078_v22  ;;  %596 = vmatpush1.bf16.msra.mxu0 %v2125_v39  ;;  %v2587_v22 = vld [vmem:[#allocation6 + $0x50] ss:$8 sps:$4 sm:$0xff]   ;;  %v2605_v39 = vld [vmem:[#allocation6 + $0x20] ss:$8 sps:$4 sm:$0xff]  }
  0x64   : > { %597 = vmatprep.subr.bf16.mxu0 %v2126_v40  ;;  %v2607_v40 = vld [vmem:[#allocation6 + $0x14] ss:$8 sps:$4 sm:$0xff]  }
  0x66   : > { %1037 = vmatpush2.bf16.msra.mxu1 %v2080_v25 }
  0x67   : > { %1038 = vmatprep.subr.bf16.mxu1 %v2081_v26  ;;  %598 = vmatpush1.bf16.msra.mxu0 %v2128_v45 }
  0x68   : > { %599 = vmatprep.subr.bf16.mxu0 %v2129_v46 }
  0x6a   : > { %1039 = vmatpush2.bf16.msra.mxu1 %v2083_v29 }
  0x6b   : > { %1040 = vmatprep.subr.bf16.mxu1 %v2084_v30  ;;  %600 = vmatpush2.bf16.msra.mxu0 %v2131_v49 }
  0x6c   : > { %601 = vmatprep.subr.bf16.mxu0 %v2132_v50 }
  0x6e   : > { %1041 = vmatpush2.bf16.msra.mxu1 %v2086_v33 }
  0x6f   : > { %1042 = vmatprep.subr.bf16.mxu1 %v2087_v34  ;;  %602 = vmatpush2.bf16.msra.mxu0 %v2134_v53  ;;  %v2184_v53 = vld [vmem:[#allocation2 + $0x134] ss:$24 sps:$4 sm:$0xff]  }
  0x70   : > { %603 = vmatprep.subr.bf16.mxu0 %v2135_v54  ;;  %v2182_v54 = vld [vmem:[#allocation2 + $0x130] ss:$24 sps:$4 sm:$0xff]  }
  0x72   : > { %1043 = vmatpush2.bf16.msra.mxu1 %v2089_v37 }
  0x73   : > { %1044 = vmatprep.subr.bf16.mxu1 %v2090_v38  ;;  %604 = vmatpush2.bf16.msra.mxu0 %v2137_v56  ;;  %v2185_v56 = vld [vmem:[#allocation2 + $0x100] ss:$24 sps:$4 sm:$0xff]  }
  0x74   : > { %605 = vmatprep.subr.bf16.mxu0 %v2138_v57  ;;  %v2190_v57 = vld [vmem:[#allocation2 + $0xd4] ss:$24 sps:$4 sm:$0xff]  }
  0x76   : > { %1045 = vmatpush2.bf16.msra.mxu1 %v2092_v42 }
  0x77   : > { %1046 = vmatprep.subr.bf16.mxu1 %v2093_v44  ;;  %606 = vmatpush2.bf16.msra.mxu0 %v2140_v59  ;;  %v2613_v44 = vld [vmem:[#allocation6 + $0x4] ss:$8 sps:$4 sm:$0xff]   ;;  %v1303_v59 = vld [vmem:[#allocation7 + $0x78] sm:$0xff] }
  0x78   : > { %607 = vmatprep.subr.bf16.mxu0 %v2141_v60  ;;  %v2188_v60 = vld [vmem:[#allocation2 + $0xd0] ss:$24 sps:$4 sm:$0xff]  }
  0x7a   : > { %1047 = vmatpush2.bf16.msra.mxu1 %v2095_v47  ;;  %v2617_v47 = vld [vmem:[#allocation6] ss:$8 sps:$4 sm:$0xff]  }
  0x7b   : > { %1048 = vmatprep.subr.bf16.mxu1 %v2096_v48  ;;  %608 = vmatpush2.bf16.msra.mxu0 %v2143_v61  ;;  %v2411_v61 = vmov 0.0  }
  0x7c   : > { %609 = vmatprep.subr.bf16.mxu0 %v2144_v62  ;;  %v1302_v62 = vld [vmem:[#allocation7 + $0x70] sm:$0xff] }
  0x7e   : > { %1049 = vmatpush2.bf16.msra.mxu1 %v2098_v51  ;;  %v2179_v51 = vld [vmem:[#allocation2 + $0x160] ss:$24 sps:$4 sm:$0xff]  }
  0x7f   : > { %1050 = vmatprep.subr.bf16.mxu1 %v2099_v52  ;;  %610 = vmatpush2.bf16.msra.mxu0 %v2146_v63  ;;  %v2181_v52 = vld [vmem:[#allocation2 + $0x164] ss:$24 sps:$4 sm:$0xff]  }
  0x80   : > { %611 = vmatprep.subr.bf16.mxu0 %v2147_v0  ;;  %v2193_v63 = vld [vmem:[#allocation2 + $0xa4] ss:$24 sps:$4 sm:$0xff]   ;;  %v1301_v0 = vld [vmem:[#allocation7 + $0x68] sm:$0xff] }
  0x82   : > { %1051 = vmatpush2.bf16.msra.mxu1 %v2103_v55  ;;  %v2187_v55 = vld [vmem:[#allocation2 + $0x104] ss:$24 sps:$4 sm:$0xff]  }
  0x83   : > { %612 = vmatpush2.bf16.msra.mxu0 %v2149_v1  ;;  %v2191_v1 = vld [vmem:[#allocation2 + $0xa0] ss:$24 sps:$4 sm:$0xff]  }
  0x84   : > { %613 = vmatprep.subr.bf16.mxu0 %v2150_v2  ;;  %v1300_v2 = vld [vmem:[#allocation7 + $0x60] sm:$0xff] }
  0x85   : > { %1053 = vmatmul.mubr.bf16.vlgmr.msra.gmra.mxu1 %v2568_v58 }
  0x87   : > { %614 = vmatpush2.bf16.msra.mxu0 %v2152_v3  ;;  %v2196_v3 = vld [vmem:[#allocation2 + $0x74] ss:$24 sps:$4 sm:$0xff]  }
  0x88   : > { %1063 = vmatprep.subr.bf16.mxu0 %v2181_v52  ;;  %v1293_v52 = vld [vmem:[#allocation7 + $0x28] sm:$0xff] }
  0x8a   : > { %616 = vmatmul.mubr.bf16.vlgmr.msra.gmra.mxu0 %v1794_v4  ;;  %v1299_v4 = vld [vmem:[#allocation7 + $0x58] sm:$0xff] }
  0x8b   : > { %1095 = vmatprep.mubr.bf16.mxu0 %v2552_v17  ;;  %v2581_v17 = vld [vmem:[#allocation6 + $0x60] ss:$8 sps:$4 sm:$0xff]   ;;  %1064 = vmatpush1.bf16.msra.mxu0 %v2179_v51  ;;  %v1295_v51 = vld [vmem:[#allocation7 + $0x38] sm:$0xff] }
  0x8c   : > { %1065 = vmatprep.subr.bf16.mxu0 %v2184_v53  ;;  %v1292_v53 = vld [vmem:[#allocation7 + $0x20] sm:$0xff] }
  0x8f   : > { %1066 = vmatpush1.bf16.msra.mxu0 %v2182_v54  ;;  %v1291_v54 = vld [vmem:[#allocation7 + $0x18] sm:$0xff] }
  0x90   : > { %1067 = vmatprep.subr.bf16.mxu0 %v2187_v55  ;;  %v1290_v55 = vld [vmem:[#allocation7 + $0x10] sm:$0xff] }
  0x93   : > { %1068 = vmatpush1.bf16.msra.mxu0 %v2185_v56  ;;  %v1289_v56 = vld [vmem:[#allocation7 + $0x8] sm:$0xff] }
  0x94   : > { %1069 = vmatprep.subr.bf16.mxu0 %v2190_v57  ;;  %v1288_v57 = vld [vmem:[#allocation7] sm:$0xff] }
  0x97   : > { %1070 = vmatpush1.bf16.msra.mxu0 %v2188_v60 }
  0x98   : > { %1071 = vmatprep.subr.bf16.mxu0 %v2193_v63 }
  0x9b   : > { %1072 = vmatpush1.bf16.msra.mxu0 %v2191_v1 }
  0x9c   : > { %1073 = vmatprep.subr.bf16.mxu0 %v2196_v3 }
 0x145   : > { %v1054_v5 = vpop.f32.mrf.mxu1 }
 0x147   : > { %v1056_v6 = vpop.f32.mrf.mxu1 }
 0x149   : > { %v1058_v7 = vpop.f32.mrf.mxu1 }
 0x14a   : > { %v1110_v9 = vpack.c.bf16 %v1058_v7, %v1054_v5  ;;  %v617_v21 = vpop.f32.mrf.mxu0  ;;  %v2194_v5 = vld [vmem:[#allocation2 + $0x70] ss:$24 sps:$4 sm:$0xff]   ;;  %v2199_v7 = vld [vmem:[#allocation2 + $0x44] ss:$24 sps:$4 sm:$0xff]  }
 0x14b   : > { %v1060_v10 = vpop.f32.mrf.mxu1  ;;  %v1106_v49 = vmul.f32 0.125, %v617_v21  ;;  %1074 = vmatpush1.bf16.msra.mxu0 %v2194_v5  ;;  %v2209_v21 = vld [vmem:[#allocation2 + $0x280] ss:$24 sps:$4 sm:$0xff]  }
 0x14c   : > { %v1111_v12 = vpack.c.bf16 %v1060_v10, %v1056_v6  ;;  %v1224_v15 = vmul.bf16 %v2574_v11, %v1110_v9  ;;  %v1222_v19 = vmul.bf16 %v2581_v17, %v1110_v9  ;;  %v619_v24 = vpop.f32.mrf.mxu0  ;;  %v1220_v27 = vmul.bf16 %v2587_v22, %v1110_v9  ;;  %v1298_v6 = vld [vmem:[#allocation7 + $0x50] sm:$0xff]  ;;  %1075 = vmatprep.subr.bf16.mxu0 %v2199_v7 }
 0x14d   : > { %v1107_v25 = vmul.f32 0.125, %v619_v24  ;;  %v1218_v33 = vmul.bf16 %v2593_v31, %v1110_v9  ;;  %v1216_v37 = vmul.bf16 %v2599_v35, %v1110_v9  ;;  %v1214_v41 = vmul.bf16 %v2605_v39, %v1110_v9  ;;  %v2202_v10 = vld [vmem:[#allocation2 + $0x14] ss:$24 sps:$4 sm:$0xff]  }
 0x14e   : > { %v1225_v14 = vmul.bf16 %v2572_v8, %v1111_v12  ;;  %v1223_v16 = vmul.bf16 %v2576_v13, %v1111_v12  ;;  %v1221_v20 = vmul.bf16 %v2583_v18, %v1111_v12  ;;  %v621_v26 = vpop.f32.mrf.mxu0  ;;  %v1219_v29 = vmul.bf16 %v2589_v23, %v1111_v12  ;;  %v2214_v24 = vld [vmem:[#allocation2 + $0x254] ss:$24 sps:$4 sm:$0xff]  }
 0x14f   : > { %v1109_v28 = vpack.c.bf16 %v1107_v25, %v1107_v25  ;;  %v1217_v34 = vmul.bf16 %v2595_v32, %v1111_v12  ;;  %v1215_v38 = vmul.bf16 %v2601_v36, %v1111_v12  ;;  %v1213_v42 = vmul.bf16 %v2607_v40, %v1111_v12  ;;  %v2212_v25 = vld [vmem:[#allocation2 + $0x250] ss:$24 sps:$4 sm:$0xff]   ;;  %v2217_v26 = vld [vmem:[#allocation2 + $0x224] ss:$24 sps:$4 sm:$0xff]  }
 0x150   : > { %1243 = vmatprep.subr.bf16.mxu1 %v1225_v14  ;;  %v622_v30 = vpop.f32.mrf.mxu0  ;;  %v1212_v45 = vmul.bf16 %v2611_v43, %v1110_v9  ;;  %v1211_v46 = vmul.bf16 %v2613_v44, %v1111_v12  ;;  %v1210_v48 = vmul.bf16 %v2617_v47, %v1110_v9  ;;  %v1108_v50 = vpack.c.bf16 %v1106_v49, %v1106_v49  ;;  %v2197_v9 = vld [vmem:[#allocation2 + $0x40] ss:$24 sps:$4 sm:$0xff]   ;;  %v2200_v12 = vld [vmem:[#allocation2 + $0x10] ss:$24 sps:$4 sm:$0xff]   ;;  %v2205_v14 = vld [vmem:[#allocation2 + $0x2e4] ss:$24 sps:$4 sm:$0xff]  }
 0x151   : > { %1244 = vmatpush1.bf16.xpose.msra.mxu1 %v1224_v15  ;;  %1275 = vmatprep.mubr.bf16.mxu1 %v1109_v28  ;;  %v2203_v15 = vld [vmem:[#allocation2 + $0x2e0] ss:$24 sps:$4 sm:$0xff]   ;;  %v2220_v28 = vld [vmem:[#allocation2 + $0x1f4] ss:$24 sps:$4 sm:$0xff]   ;;  %v2223_v30 = vld [vmem:[#allocation2 + $0x1c4] ss:$24 sps:$4 sm:$0xff]  }
 0x152   : > { %1245 = vmatprep.subr.bf16.mxu1 %v1223_v16  ;;  %1076 = vmatpush1.bf16.msra.mxu0 %v2197_v9  ;;  %v2208_v16 = vld [vmem:[#allocation2 + $0x2b4] ss:$24 sps:$4 sm:$0xff]  }
 0x153   : > { %1077 = vmatprep.subr.bf16.mxu0 %v2202_v10  ;;  %v1297_v49 = vld [vmem:[#allocation7 + $0x48] sm:$0xff] }
 0x156   : > { %1078 = vmatpush1.bf16.msra.mxu0 %v2200_v12 }
 0x157   : > { %1079 = vmatprep.subr.bf16.mxu0 %v2205_v14 }
 0x159   : > { %1246 = vmatpush1.bf16.xpose.msra.mxu1 %v1222_v19  ;;  %v2206_v19 = vld [vmem:[#allocation2 + $0x2b0] ss:$24 sps:$4 sm:$0xff]  }
 0x15a   : > { %1247 = vmatprep.subr.bf16.mxu1 %v1221_v20  ;;  %1080 = vmatpush2.bf16.msra.mxu0 %v2203_v15  ;;  %v2211_v20 = vld [vmem:[#allocation2 + $0x284] ss:$24 sps:$4 sm:$0xff]  }
 0x15b   : > { %1081 = vmatprep.subr.bf16.mxu0 %v2208_v16  ;;  %v2229_v15 = vld [vmem:[#allocation4 + $0x74] ss:$8 sps:$4 sm:$0xff]   ;;  %v2232_v16 = vld [vmem:[#allocation4 + $0x64] ss:$8 sps:$4 sm:$0xff]  }
 0x15e   : > { %1082 = vmatpush2.bf16.msra.mxu0 %v2206_v19  ;;  %v2238_v19 = vld [vmem:[#allocation4 + $0x44] ss:$8 sps:$4 sm:$0xff]  }
 0x15f   : > { %1083 = vmatprep.subr.bf16.mxu0 %v2211_v20  ;;  %v2239_v20 = vld [vmem:[#allocation4 + $0x30] ss:$8 sps:$4 sm:$0xff]  }
 0x161   : > { %1248 = vmatpush1.bf16.xpose.msra.mxu1 %v1220_v27  ;;  %v2215_v27 = vld [vmem:[#allocation2 + $0x220] ss:$24 sps:$4 sm:$0xff]  }
 0x162   : > { %1249 = vmatprep.subr.bf16.mxu1 %v1219_v29  ;;  %1084 = vmatpush2.bf16.msra.mxu0 %v2209_v21  ;;  %v2218_v29 = vld [vmem:[#allocation2 + $0x1f0] ss:$24 sps:$4 sm:$0xff]   ;;  %v2244_v21 = vld [vmem:[#allocation4 + $0x24] ss:$8 sps:$4 sm:$0xff]  }
 0x163   : > { %1085 = vmatprep.subr.bf16.mxu0 %v2214_v24  ;;  %v2242_v24 = vld [vmem:[#allocation4 + $0x20] ss:$8 sps:$4 sm:$0xff]  }
 0x166   : > { %1086 = vmatpush2.bf16.msra.mxu0 %v2212_v25  ;;  %v2247_v25 = vld [vmem:[#allocation4 + $0x14] ss:$8 sps:$4 sm:$0xff]  }
 0x167   : > { %1087 = vmatprep.subr.bf16.mxu0 %v2217_v26  ;;  %v2245_v26 = vld [vmem:[#allocation4 + $0x10] ss:$8 sps:$4 sm:$0xff]  }
 0x169   : > { %1250 = vmatpush1.bf16.xpose.msra.mxu1 %v1218_v33  ;;  %v2221_v33 = vld [vmem:[#allocation2 + $0x1c0] ss:$24 sps:$4 sm:$0xff]  }
 0x16a   : > { %1251 = vmatprep.subr.bf16.mxu1 %v1217_v34  ;;  %1088 = vmatpush2.bf16.msra.mxu0 %v2215_v27  ;;  %v2226_v34 = vld [vmem:[#allocation2 + $0x194] ss:$24 sps:$4 sm:$0xff]  }
 0x16b   : > { %1089 = vmatprep.subr.bf16.mxu0 %v2220_v28  ;;  %v2250_v27 = vld [vmem:[#allocation4 + $0x4] ss:$8 sps:$4 sm:$0xff]   ;;  %v2248_v28 = vld [vmem:[#allocation4] ss:$8 sps:$4 sm:$0xff]  }
 0x16e   : > { %1090 = vmatpush2.bf16.msra.mxu0 %v2218_v29  ;;  %v2253_v29 = vld [vmem:[#allocation4 + $0xf4] ss:$8 sps:$4 sm:$0xff]  }
 0x16f   : > { %1091 = vmatprep.subr.bf16.mxu0 %v2223_v30  ;;  %v2251_v30 = vld [vmem:[#allocation4 + $0xf0] ss:$8 sps:$4 sm:$0xff]  }
 0x171   : > { %1252 = vmatpush1.bf16.xpose.msra.mxu1 %v1216_v37  ;;  %v2224_v37 = vld [vmem:[#allocation2 + $0x190] ss:$24 sps:$4 sm:$0xff]  }
 0x172   : > { %1253 = vmatprep.subr.bf16.mxu1 %v1215_v38  ;;  %1092 = vmatpush2.bf16.msra.mxu0 %v2221_v33  ;;  %v1242_v38 = vld [vmem:[%s376_s23] sm:$0xff] }
 0x173   : > { %1093 = vmatprep.subr.bf16.mxu0 %v2226_v34  ;;  %v2256_v33 = vld [vmem:[#allocation4 + $0xe4] ss:$8 sps:$4 sm:$0xff]   ;;  %v2254_v34 = vld [vmem:[#allocation4 + $0xe0] ss:$8 sps:$4 sm:$0xff]  }
 0x176   : > { %1094 = vmatpush2.bf16.msra.mxu0 %v2224_v37  ;;  %v2259_v37 = vld [vmem:[#allocation4 + $0xd4] ss:$8 sps:$4 sm:$0xff]  }
 0x177   : > { %1625 = vmatprep.subr.bf16.mxu0 %v2229_v15 }
 0x179   : > { %1254 = vmatpush1.bf16.xpose.msra.mxu1 %v1214_v41  ;;  %1096 = vmatmul.mubr.bf16.vlgmr.msra.gmra.mxu0 %v2568_v58  ;;  %v1294_v58 = vld [vmem:[#allocation7 + $0x30] sm:$0xff] }
 0x17a   : > { %1255 = vmatprep.subr.bf16.mxu1 %v1213_v42 }
 0x181   : > { %1256 = vmatpush1.bf16.xpose.msra.mxu1 %v1212_v45 }
 0x182   : > { %1257 = vmatprep.subr.bf16.mxu1 %v1211_v46 }
 0x189   : > { %1258 = vmatpush1.bf16.xpose.msra.mxu1 %v1210_v48 }
 0x18a   : > { %1963 = vmatprep.subr.mxu1 %v2411_v61 }
 0x190   : > { %1276 = vmatmul.mubr.bf16.vlgmr.msra.gmra.mxu1 %v1108_v50  ;;  %v1296_v50 = vld [vmem:[#allocation7 + $0x40] sm:$0xff] }
 0x191   : > { %1964 = vmatpush3.msra.mxu1 %v1303_v59  ;;  %1995 = vmatprep.mubr.msk.f32.mxu1 %vm2412_vm0, %v2411_v61 }
 0x192   : > { %1965 = vmatprep.subr.mxu1 %v2411_v61 }
 0x193   : > { %1966 = vmatpush3.msra.mxu1 %v1302_v62 }
 0x194   : > { %1967 = vmatprep.subr.mxu1 %v2411_v61 }
 0x195   : > { %1968 = vmatpush3.msra.mxu1 %v1301_v0 }
 0x196   : > { %1969 = vmatprep.subr.mxu1 %v2411_v61 }
 0x197   : > { %1970 = vmatpush3.msra.mxu1 %v1300_v2 }
 0x198   : > { %1971 = vmatprep.subr.mxu1 %v2411_v61 }
 0x199   : > { %1972 = vmatpush3.msra.mxu1 %v1299_v4 }
 0x19a   : > { %1973 = vmatprep.subr.mxu1 %v2411_v61 }
 0x19b   : > { %1974 = vmatpush3.msra.mxu1 %v1298_v6 }
 0x19c   : > { %1975 = vmatprep.subr.mxu1 %v2411_v61 }
 0x19d   : > { %1976 = vmatpush3.msra.mxu1 %v1297_v49  ;;  %v2266_v49 = vld [vmem:[#allocation4 + $0xa0] ss:$8 sps:$4 sm:$0xff]  }
 0x19e   : > { %1977 = vmatprep.subr.mxu1 %v2411_v61 }
 0x19f   : > { %1978 = vmatpush3.msra.mxu1 %v1296_v50  ;;  %v2271_v50 = vld [vmem:[#allocation4 + $0x94] ss:$8 sps:$4 sm:$0xff]  }
 0x1a0   : > { %1979 = vmatprep.subr.mxu1 %v2411_v61 }
 0x1a1   : > { %1980 = vmatpush3.msra.mxu1 %v1295_v51  ;;  %v2269_v51 = vld [vmem:[#allocation4 + $0x90] ss:$8 sps:$4 sm:$0xff]  }
 0x1a2   : > { %1981 = vmatprep.subr.mxu1 %v2411_v61 }
 0x1a3   : > { %1982 = vmatpush3.msra.mxu1 %v1294_v58 }
 0x1a4   : > { %1983 = vmatprep.subr.mxu1 %v2411_v61 }
 0x1a5   : > { %1984 = vmatpush3.msra.mxu1 %v1293_v52 }
 0x1a6   : > { %1985 = vmatprep.subr.mxu1 %v2411_v61 }
 0x1a7   : > { %1986 = vmatpush3.msra.mxu1 %v1292_v53 }
 0x1a8   : > { %1987 = vmatprep.subr.mxu1 %v2411_v61 }
 0x1a9   : > { %1988 = vmatpush3.msra.mxu1 %v1291_v54 }
 0x1aa   : > { %1989 = vmatprep.subr.mxu1 %v2411_v61 }
 0x1ab   : > { %1990 = vmatpush3.msra.mxu1 %v1290_v55 }
 0x1ac   : > { %1991 = vmatprep.subr.mxu1 %v2411_v61 }
 0x1ad   : > { %1992 = vmatpush3.msra.mxu1 %v1289_v56 }
 0x1ae   : > { %1993 = vmatprep.subr.mxu1 %v2411_v61 }
 0x1af   : > { %1994 = vmatpush3.msra.mxu1 %v1288_v57  ;;  %v2272_v57 = vld [vmem:[#allocation4 + $0x80] ss:$8 sps:$4 sm:$0xff]  }
 0x239   : > { %v1097_v59 = vpop.f32.mrf.mxu0 }
 0x23b   : > { %v1099_v60 = vpop.f32.mrf.mxu0 }
 0x23d   : > { %v1101_v63 = vpop.f32.mrf.mxu0 }
 0x23e   : > { %v1112_v5 = vpack.c.bf16 %v1101_v63, %v1097_v59  ;;  %v2274_v59 = vld [vmem:[#allocation4 + $0x84] ss:$8 sps:$4 sm:$0xff]  }
 0x23f   : > { %v1103_v1 = vpop.f32.mrf.mxu0 }
 0x240   : > { %v1113_v3 = vpack.c.bf16 %v1103_v1, %v1099_v60  ;;  %v1240_v6 = vmul.bf16 %v2574_v11, %v1112_v5  ;;  %v1238_v61 = vmul.bf16 %v2581_v17, %v1112_v5  ;;  %v1236_v12 = vmul.bf16 %v2587_v22, %v1112_v5 }
 0x241   : > { %v1234_v11 = vmul.bf16 %v2593_v31, %v1112_v5  ;;  %v1232_v14 = vmul.bf16 %v2599_v35, %v1112_v5  ;;  %v2413_v35 = vmov 0  }
 0x242   : > { %v1241_v4 = vmul.bf16 %v2572_v8, %v1113_v3  ;;  %v1239_v7 = vmul.bf16 %v2576_v13, %v1113_v3  ;;  %v1237_v10 = vmul.bf16 %v2583_v18, %v1113_v3  ;;  %v1235_v8 = vmul.bf16 %v2589_v23, %v1113_v3 }
 0x243   : > { %v1233_v13 = vmul.bf16 %v2595_v32, %v1113_v3  ;;  %v1231_v17 = vmul.bf16 %v2601_v36, %v1113_v3  ;;  %v1230_v18 = vmul.bf16 %v2605_v39, %v1112_v5  ;;  %v1229_v22 = vmul.bf16 %v2607_v40, %v1113_v3  ;;  %v2227_v36 = vld [vmem:[#allocation4 + $0x70] ss:$8 sps:$4 sm:$0xff]   ;;  %v2230_v39 = vld [vmem:[#allocation4 + $0x60] ss:$8 sps:$4 sm:$0xff]   ;;  %v2235_v40 = vld [vmem:[#allocation4 + $0x54] ss:$8 sps:$4 sm:$0xff]  }
 0x244   : > { %1378 = vmatprep.subr.bf16.mxu1 %v1241_v4  ;;  %v1228_v23 = vmul.bf16 %v2611_v43, %v1112_v5  ;;  %v1227_v31 = vmul.bf16 %v2613_v44, %v1113_v3  ;;  %v1226_v32 = vmul.bf16 %v2617_v47, %v1112_v5  ;;  %1626 = vmatpush1.bf16.msra.mxu0 %v2227_v36  ;;  %v2233_v43 = vld [vmem:[#allocation4 + $0x50] ss:$8 sps:$4 sm:$0xff]   ;;  %v2236_v44 = vld [vmem:[#allocation4 + $0x40] ss:$8 sps:$4 sm:$0xff]   ;;  %v2241_v47 = vld [vmem:[#allocation4 + $0x34] ss:$8 sps:$4 sm:$0xff]   ;;  %v1455_v3 = vlaneseq }
 0x245   : > { %1627 = vmatprep.subr.bf16.mxu0 %v2232_v16 }
 0x246   : > { %v1456_v4 = vshrl.u32 %v1455_v3, 7 }
 0x248   : > { %1628 = vmatpush1.bf16.msra.mxu0 %v2230_v39  ;;  %v1457_v5 = vsub.s32 0, %v1456_v4 }
 0x249   : > { %1629 = vmatprep.subr.bf16.mxu0 %v2235_v40 }
 0x24c   : > { %1630 = vmatpush1.bf16.msra.mxu0 %v2233_v43 }
 0x24d   : > { %1631 = vmatprep.subr.bf16.mxu0 %v2238_v19 }
 0x250   : > { %v1277_v41 = vpop.f32.mrf.mxu1  ;;  %1632 = vmatpush1.bf16.msra.mxu0 %v2236_v44 }
 0x251   : > { %v1278_v42 = vadd.f32 %v1277_v41, %v1242_v38  ;;  %1633 = vmatprep.subr.bf16.mxu0 %v2241_v47  ;;  %v2257_v38 = vld [vmem:[#allocation4 + $0xd0] ss:$8 sps:$4 sm:$0xff]   ;;  %v2262_v41 = vld [vmem:[#allocation4 + $0xc4] ss:$8 sps:$4 sm:$0xff]  }
 0x252   : > { %v1279_v45 = vpop.f32.mrf.mxu1 }
 0x253   : > { %1283 = vmax.xlane.f32.xlu0 %v1278_v42  ;;  %v2265_v45 = vld [vmem:[#allocation4 + $0xb4] ss:$8 sps:$4 sm:$0xff]  }
 0x254   : > { %v1280_v46 = vpop.f32.mrf.mxu1  ;;  %1634 = vmatpush1.bf16.msra.mxu0 %v2239_v20 }
 0x255   : > { %1635 = vmatprep.subr.bf16.mxu0 %v2244_v21  ;;  %v2263_v46 = vld [vmem:[#allocation4 + $0xb0] ss:$8 sps:$4 sm:$0xff]  }
 0x256   : > { %v1281_v48 = vpop.f32.mrf.mxu1 }
 0x257   : > { %v2268_v48 = vld [vmem:[#allocation4 + $0xa4] ss:$8 sps:$4 sm:$0xff]  }
 0x258   : > { %1636 = vmatpush1.bf16.msra.mxu0 %v2242_v24 }
 0x259   : > { %1637 = vmatprep.subr.bf16.mxu0 %v2247_v25 }
 0x25c   : > { %1638 = vmatpush1.bf16.msra.mxu0 %v2245_v26 }
 0x25d   : > { %1639 = vmatprep.subr.bf16.mxu0 %v2250_v27 }
 0x260   : > { %1640 = vmatpush1.bf16.msra.mxu0 %v2248_v28 }
 0x261   : > { %1641 = vmatprep.subr.bf16.mxu0 %v2253_v29 }
 0x264   : > { %1642 = vmatpush2.bf16.msra.mxu0 %v2251_v30 }
 0x265   : > { %1643 = vmatprep.subr.bf16.mxu0 %v2256_v33 }
 0x268   : > { %1644 = vmatpush2.bf16.msra.mxu0 %v2254_v34 }
 0x269   : > { %1645 = vmatprep.subr.bf16.mxu0 %v2259_v37 }
 0x26c   : > { %1646 = vmatpush2.bf16.msra.mxu0 %v2257_v38 }
 0x26d   : > { %1647 = vmatprep.subr.bf16.mxu0 %v2262_v41 }
 0x2dc   : > { %v1284_v62 = vpop.xlane.xlu0 %1283 }
 0x2dd   : > { %v1285_v0 = vsub.f32 %v1278_v42, %v1284_v62  ;;  %v2260_v42 = vld [vmem:[#allocation4 + $0xc0] ss:$8 sps:$4 sm:$0xff]  }
 0x2de   : > { %1648 = vmatpush2.bf16.msra.mxu0 %v2260_v42 }
 0x2df   : > { %v1286_v2 = vmul.f32 1.442695, %v1285_v0  ;;  %1649 = vmatprep.subr.bf16.mxu0 %v2265_v45 }
 0x2e1   : > { %2275 = vpow2.f32 %v1286_v2 }
 0x2e2   : > { %1650 = vmatpush2.bf16.msra.mxu0 %v2263_v46 }
 0x2e3   : > { %1651 = vmatprep.subr.bf16.mxu0 %v2268_v48 }
 0x2e6   : > { %1652 = vmatpush2.bf16.msra.mxu0 %v2266_v49 }
 0x2e7   : > { %1653 = vmatprep.subr.bf16.mxu0 %v2271_v50 }
 0x2ea   : > { %1654 = vmatpush2.bf16.msra.mxu0 %v2269_v51 }
 0x2eb   : > { %1655 = vmatprep.subr.bf16.mxu0 %v2274_v59 }
 0x2ee   : > { %v2646_v9 = vpop.eup %2275  ;;  %1656 = vmatpush2.bf16.msra.mxu0 %v2272_v57 }
 0x2ef   : > { %1996 = vmatmul.mubr.f32.vlgmr.msra.gmra.mxu1 %v2646_v9 }
 0x2f0   : > { %1379 = vmatpush1.bf16.msra.mxu1 %v1240_v6  ;;  %1410 = vmatprep.mubr.bf16.mxu1 %v2413_v35  ;;  %v1453_v6 = vld [vmem:[%s2677_s4] sm:$0x3] }
 0x2f1   : > { %1380 = vmatprep.subr.bf16.mxu1 %v1239_v7  ;;  %v1461_v7 = vsub.s32 1, %v1456_v4 }
 0x2f4   : > { %1381 = vmatpush1.bf16.msra.mxu1 %v1238_v61  ;;  %v1462_v61 = vrot.slane %v1453_v6, %v1461_v7 }
 0x2f5   : > { %1382 = vmatprep.subr.bf16.mxu1 %v1237_v10 }
 0x2f8   : > { %1383 = vmatpush1.bf16.msra.mxu1 %v1236_v12 }
 0x2f9   : > { %1384 = vmatprep.subr.bf16.mxu1 %v1235_v8 }
 0x2fc   : > { %1385 = vmatpush1.bf16.msra.mxu1 %v1234_v11 }
 0x2fd   : > { %1386 = vmatprep.subr.bf16.mxu1 %v1233_v13 }
 0x300   : > { %1387 = vmatpush1.bf16.msra.mxu1 %v1232_v14 }
 0x301   : > { %1388 = vmatprep.subr.bf16.mxu1 %v1231_v17 }
 0x304   : > { %1389 = vmatpush1.bf16.msra.mxu1 %v1230_v18 }
 0x305   : > { %1390 = vmatprep.subr.bf16.mxu1 %v1229_v22 }
 0x308   : > { %1391 = vmatpush1.bf16.msra.mxu1 %v1228_v23 }
 0x309   : > { %1392 = vmatprep.subr.bf16.mxu1 %v1227_v31 }
 0x30c   : > { %1393 = vmatpush1.bf16.msra.mxu1 %v1226_v32 }
 0x3af   : > { %v1370_v58 = vpop.f32.mrf.mxu1 }
 0x3b0   : > { %v1374_v52 = vmax.f32 %v1370_v58, 1e-30 }
 0x3b1   : > { %v1997_v53 = vpop.f32.mrf.mxu1 }
 0x3b2   : > { %2277 = vrcp.f32 %v1374_v52 }
 0x3bf   : > { %v2278_v54 = vpop.eup %2277 }
 0x3c0   : > { %v1376_v55 = vmul.f32 %v2278_v54, %v2646_v9  ;;  %v1458_v9 = vrot.slane %v1453_v6, %v1457_v5 }
 0x3c2   : > { %v1377_v56 = vpack.c.bf16 %v1376_v55, %v1376_v55 }
 0x3c4   : > { %1411 = vmatmul.mubr.bf16.vlgmr.msra.gmra.mxu1 %v1377_v56 }
 0x484   : > { %v1412_v60 = vpop.f32.mrf.mxu1 }
 0x485   : > { %v1419_v0 = vpack.c.bf16 %v1412_v60, %v1412_v60 }
 0x486   : > { %v1414_v62 = vpop.f32.mrf.mxu1 }
 0x487   : > { %v1420_v63 = vpack.c.bf16 %v1414_v62, %v1414_v62 }
 0x488   : > { %v1416_v1 = vpop.f32.mrf.mxu1 }
 0x489   : > { %1657 = vmatprep.mubr.bf16.mxu0 %v1420_v63 }
 0x48a   : > { %v1417_v2 = vpop.f32.mrf.mxu1  ;;  %1658 = vmatmul.mubr.bf16.vlgmr.msra.gmra.mxu0 %v1419_v0 }
 0x54a   : > { %v1659_v10 = vpop.f32.mrf.mxu0 }
 0x54b   : > { %v1660_v12 = vadd.f32 %v1659_v10, %v1458_v9 }
 0x54c   : > { %v1661_v8 = vpop.f32.mrf.mxu0 }
 0x54d   : > { %1666 = vst [vmem:[%s381_s10] sm:$0xff] %v1660_v12  ;;  %v1662_v11 = vadd.f32 %v1661_v8, %v1462_v61 }
 0x54e   : > { %v1663_v13 = vpop.f32.mrf.mxu0 }
 0x54f   : > { %1667 = vst [vmem:[%s381_s10 + $0x8] sm:$0xff] %v1662_v11 }
 0x550   : > { %v1664_v14 = vpop.f32.mrf.mxu0 }
 0x551 PF: > { %s21_s27 = sadd.s32 1, %s2401_s27  }
 0x552   : > { %p18_p3 = scmp.ge.s32.totalorder %s21_s27, 4  }
 0x554   :  { %20 = sbr.rel (!%p18_p3) target bundleno = 3 (0x3), region = 102 }
 0x559   :  { %1689 = vsyncpa [#allocation3], 1 }
 0x55a   :  { %1691 = vsyncpa [#allocation3 + $0x1], 1 }
 0x55b   :  { %1692 = vsyncpa [#allocation5], 1 }
 0x55c   :  { %1693 = vsyncpa [#allocation8], 1 }

</bundles_post_ra>
